<compile_context>
chip_gen: v7x
topology: tpu7x:2x2x1
jax: 0.10.0
libtpu: 0.0.40
codegen_flags: <defaults>
</compile_context>

<pallas_src>
import functools

import numpy as np
import jax
import jax.numpy as jnp
from jax.experimental import pallas as pl
from jax.experimental.pallas import tpu as pltpu


# ----------------------------------------------------------------------------
# Deterministic parameter construction (mirrors generate_mixing / __init__).
# scipy.stats.ortho_group is replaced by a QR-based Haar orthogonal sample so
# the script is self-contained and deterministic.  generate_mixing requires
# n <= d, which for the module means in_dim <= out_dim (hidden = min(in, out)).
# ----------------------------------------------------------------------------
def generate_mixing(n, d, np_rng, decoder_min_cond_num=0.1):
    assert n <= d, "generate_mixing requires n <= d"
    g = np_rng.normal(size=(d, d))
    q, r = np.linalg.qr(g)
    q = q * np.sign(np.diag(r))[None, :]          # Haar-distributed orthogonal
    decoder_q = q[:, :n]                          # (d, n)
    decoder_r = np_rng.random((n, n)) - 0.5
    svs = np.linalg.svd(decoder_r, compute_uv=False)
    while svs[-1] / svs[0] < decoder_min_cond_num:
        decoder_r = np_rng.random((n, n)) - 0.5
        svs = np.linalg.svd(decoder_r, compute_uv=False)
    decoder = decoder_q @ decoder_r               # (d, n)
    encoder = np.linalg.pinv(decoder)             # (n, d)
    return decoder, encoder


def build_invertible_mlp_params(in_dim, out_dim, num_layers=2, seed=0):
    """Replicates InvertibleMlp.__init__ (it unpacks (decoder, encoder) from
    generate_mixing as (enc, dec); the name swap is intentional)."""
    assert num_layers >= 2
    assert in_dim <= out_dim, (
        "InvertibleMlp only constructs when in_dim <= out_dim "
        "(generate_mixing(in_dim, hidden_dim) needs in_dim <= hidden_dim)")
    hidden_dim = min(in_dim, out_dim)
    rng = np.random.default_rng(seed)
    encoders, decoders = [], []
    enc, dec = generate_mixing(in_dim, hidden_dim, rng)       # enc:(h,in) dec:(in,h)
    encoders.append(enc.astype(np.float32))
    decoders.append(dec.astype(np.float32))
    for _ in range(1, num_layers - 1):
        enc, dec = generate_mixing(hidden_dim, hidden_dim, rng)
        encoders.append(enc.astype(np.float32))
        decoders.append(dec.astype(np.float32))
    enc, dec = generate_mixing(hidden_dim, out_dim, rng)      # enc:(out,h) dec:(h,out)
    encoders.append(enc.astype(np.float32))
    decoders.append(dec.astype(np.float32))
    return [jnp.asarray(e) for e in encoders], [jnp.asarray(d) for d in decoders]


# ----------------------------------------------------------------------------
# Pallas kernel: full encode + decode chain on one feature-major batch tile.
# ----------------------------------------------------------------------------
def make_forward_kernel(num_layers, fuse_seam):
    def kernel(x_ref, *refs):
        enc_refs = refs[:num_layers]
        dec_refs = refs[num_layers:2 * num_layers]
        o_ref = refs[2 * num_layers]

        # (features, batch_tile) float32, batch on lanes.
        h = x_ref[...]

        # encode:  h <- tanh(enc_i @ h)       == (x @ enc_i.T).T
        for li, enc in enumerate(enc_refs):
            z = jnp.dot(enc[...], h, preferred_element_type=jnp.float32)
            h = z if (fuse_seam and li == num_layers - 1) else jnp.tanh(z)

        # decode:  h <- dec_i @ arctanh(h)    == (arctanh(x) @ dec_i.T).T
        # arctanh via ONE log: 0.5*log((1+h)/(1-h)).  Divide = EUP recip +
        # Newton on the idle VPU; keeps torch semantics (+/-inf at |h|=1).
        for li, dec in enumerate(dec_refs[::-1]):
            if fuse_seam and li == 0:
                at = h          # opt-in: arctanh(tanh(.)) cancelled at the seam
            else:
                at = 0.5 * jnp.log((1.0 + h) / (1.0 - h))
            h = jnp.dot(dec[...], at, preferred_element_type=jnp.float32)

        o_ref[...] = h

    return kernel


def _auto_batch_tile(batch):
    # Aim for a 2-tile grid: feeds both TensorCores on v7x through the
    # "parallel" grid axis, while on 1-TC chips the single extra grid step is
    # ~0.35us, i.e. negligible.  Tiles are 128-lane multiples, capped at 8192.
    tile = -(-batch // 2)
    tile = max(128, -(-tile // 128) * 128)
    return min(tile, 8192)


@functools.partial(jax.jit, static_argnames=("batch_tile", "fuse_seam"))
def _forward_impl(x, encoders, decoders, batch_tile, fuse_seam):
    B, in_dim = x.shape
    num_layers = len(encoders)

    # Feature-major: batch on the lane axis.  Under jit the cast/transpose/pad
    # and the final slice/transpose fuse into this single program, so there is
    # no extra per-op dispatch overhead around the pallas_call.
    x_t = x.astype(jnp.float32).T                       # (in_dim, B)
    grid_b = max(1, -(-B // batch_tile))
    B_pad = grid_b * batch_tile
    if B_pad != B:
        # zero columns pass harmlessly through tanh / arctanh
        x_t = jnp.pad(x_t, ((0, 0), (0, B_pad - B)))

    # x / out tiled over the batch axis; each weight is one full-array block
    # with a constant index_map, so it stays VMEM-resident across all tiles.
    in_specs = [pl.BlockSpec((in_dim, batch_tile), lambda i: (0, i))]
    for w in list(encoders) + list(decoders):
        in_specs.append(pl.BlockSpec(w.shape, lambda i: (0, 0)))
    out_spec = pl.BlockSpec((in_dim, batch_tile), lambda i: (0, i))

    out_t = pl.pallas_call(
        make_forward_kernel(num_layers, fuse_seam),
        out_shape=jax.ShapeDtypeStruct((in_dim, B_pad), jnp.float32),
        grid_spec=pltpu.PrefetchScalarGridSpec(
            num_scalar_prefetch=0,
            grid=(grid_b,),
            in_specs=in_specs,
            out_specs=out_spec,
        ),
        compiler_params=pltpu.CompilerParams(
            dimension_semantics=("parallel",),      # batch tiles shard across TCs
        ),
    )(x_t, *encoders, *decoders)

    return out_t[:, :B].T.astype(x.dtype)


def invertible_mlp_forward(x, encoders, decoders, *, batch_tile=None,
                           fuse_seam=False):
    """x: (batch, in_dim) -> (batch, in_dim), matching InvertibleMlp.forward.

    fuse_seam=True applies the arctanh(tanh(.)) cancellation at the
    encode/decode seam (fewer EUP transcendentals, but finite outputs where
    the reference saturates to +/-inf) -- OFF by default to keep exact module
    semantics."""
    B, _ = x.shape
    if batch_tile is None:
        batch_tile = _auto_batch_tile(B)
    assert batch_tile % 128 == 0, "batch tile must be a multiple of 128 lanes"
    return _forward_impl(x, tuple(encoders), tuple(decoders),
                         batch_tile, fuse_seam)


# Pure-JAX reference (PyTorch math, row-major) for the correctness check.
def forward_ref(x, encoders, decoders):
    h = x
    for enc in encoders:
        h = jnp.tanh(h @ enc.T)
    for dec in decoders[::-1]:
        h = jnp.arctanh(h) @ dec.T
    return h


if __name__ == "__main__":
    B, IN_DIM, OUT_DIM, NUM_LAYERS = 1024, 8, 16, 3

    encoders, decoders = build_invertible_mlp_params(
        IN_DIM, OUT_DIM, num_layers=NUM_LAYERS, seed=0
    )

    key = jax.random.PRNGKey(0)
    # small-magnitude inputs keep tanh away from saturation so arctanh stays finite
    x = 0.1 * jax.random.normal(key, (B, IN_DIM), dtype=jnp.float32)

    # auto batch_tile -> 512 columns, grid=(2,) "parallel" (both TCs on v7x)
    out = invertible_mlp_forward(x, encoders, decoders)
    out = jax.block_until_ready(out)

    ref = jax.block_until_ready(forward_ref(x, encoders, decoders))
    assert out.shape == (B, IN_DIM)
    np.testing.assert_allclose(np.asarray(out), np.asarray(ref),
                               rtol=1e-3, atol=1e-5)

    print("KERNEL_OK")
</pallas_src>

<mosaic_0001>
module attributes {stable_mosaic.version = 11 : i64} {
  func.func @kernel(%arg0: i32, %arg1: memref<8x512xf32, #tpu.memory_space<vmem>>, %arg2: memref<8x8xf32, #tpu.memory_space<vmem>>, %arg3: memref<8x8xf32, #tpu.memory_space<vmem>>, %arg4: memref<16x8xf32, #tpu.memory_space<vmem>>, %arg5: memref<8x8xf32, #tpu.memory_space<vmem>>, %arg6: memref<8x8xf32, #tpu.memory_space<vmem>>, %arg7: memref<8x16xf32, #tpu.memory_space<vmem>>, %arg8: memref<8x512xf32, #tpu.memory_space<vmem>>) attributes {dimension_semantics = [#tpu.dimension_semantics<parallel>], iteration_bounds = array<i64: 2>, scalar_prefetch = 0 : i64, scratch_operands = 0 : i64, tpu.core_type = #tpu.core_type<tc>, window_params = [{transform_indices = @transform_0, window_bounds = array<i64: 8, 512>}, {pipeline_mode = #tpu.pipeline_mode<synchronous>, transform_indices = @transform_1, window_bounds = array<i64: 8, 8>}, {pipeline_mode = #tpu.pipeline_mode<synchronous>, transform_indices = @transform_2, window_bounds = array<i64: 8, 8>}, {pipeline_mode = #tpu.pipeline_mode<synchronous>, transform_indices = @transform_3, window_bounds = array<i64: 16, 8>}, {pipeline_mode = #tpu.pipeline_mode<synchronous>, transform_indices = @transform_4, window_bounds = array<i64: 8, 8>}, {pipeline_mode = #tpu.pipeline_mode<synchronous>, transform_indices = @transform_5, window_bounds = array<i64: 8, 8>}, {pipeline_mode = #tpu.pipeline_mode<synchronous>, transform_indices = @transform_6, window_bounds = array<i64: 8, 16>}, {transform_indices = @transform_7, window_bounds = array<i64: 8, 512>}]} {
    %c0 = arith.constant 0 : index
    %c0_0 = arith.constant 0 : index
    %0 = vector.load %arg1[%c0, %c0_0] : memref<8x512xf32, #tpu.memory_space<vmem>>, vector<8x512xf32>
    %c0_1 = arith.constant 0 : index
    %c0_2 = arith.constant 0 : index
    %1 = vector.load %arg2[%c0_1, %c0_2] : memref<8x8xf32, #tpu.memory_space<vmem>>, vector<8x8xf32>
    %cst = arith.constant dense<0.000000e+00> : vector<8x512xf32>
    %2 = tpu.matmul %1, %0, %cst {dimension_numbers = #tpu.dot_dimension_numbers<[1], [0], [0], [1], [0, 0, 1, 1], [], []>} : vector<8x8xf32>, vector<8x512xf32>, vector<8x512xf32> -> vector<8x512xf32>
    %3 = math.tanh %2 : vector<8x512xf32>
    %c0_3 = arith.constant 0 : index
    %c0_4 = arith.constant 0 : index
    %4 = vector.load %arg3[%c0_3, %c0_4] : memref<8x8xf32, #tpu.memory_space<vmem>>, vector<8x8xf32>
    %cst_5 = arith.constant dense<0.000000e+00> : vector<8x512xf32>
    %5 = tpu.matmul %4, %3, %cst_5 {dimension_numbers = #tpu.dot_dimension_numbers<[1], [0], [0], [1], [0, 0, 1, 1], [], []>} : vector<8x8xf32>, vector<8x512xf32>, vector<8x512xf32> -> vector<8x512xf32>
    %6 = math.tanh %5 : vector<8x512xf32>
    %c0_6 = arith.constant 0 : index
    %c0_7 = arith.constant 0 : index
    %7 = vector.load %arg4[%c0_6, %c0_7] : memref<16x8xf32, #tpu.memory_space<vmem>>, vector<16x8xf32>
    %cst_8 = arith.constant dense<0.000000e+00> : vector<16x512xf32>
    %8 = tpu.matmul %7, %6, %cst_8 {dimension_numbers = #tpu.dot_dimension_numbers<[1], [0], [0], [1], [0, 0, 1, 1], [], []>} : vector<16x8xf32>, vector<8x512xf32>, vector<16x512xf32> -> vector<16x512xf32>
    %9 = math.tanh %8 : vector<16x512xf32>
    %cst_9 = arith.constant 1.000000e+00 : f32
    %10 = vector.broadcast %cst_9 : f32 to vector<16x512xf32>
    %11 = arith.addf %10, %9 : vector<16x512xf32>
    %cst_10 = arith.constant 1.000000e+00 : f32
    %12 = vector.broadcast %cst_10 : f32 to vector<16x512xf32>
    %13 = arith.subf %12, %9 : vector<16x512xf32>
    %14 = arith.divf %11, %13 : vector<16x512xf32>
    %15 = math.log %14 : vector<16x512xf32>
    %cst_11 = arith.constant 5.000000e-01 : f32
    %16 = vector.broadcast %cst_11 : f32 to vector<16x512xf32>
    %17 = arith.mulf %16, %15 : vector<16x512xf32>
    %c0_12 = arith.constant 0 : index
    %c0_13 = arith.constant 0 : index
    %18 = vector.load %arg7[%c0_12, %c0_13] : memref<8x16xf32, #tpu.memory_space<vmem>>, vector<8x16xf32>
    %cst_14 = arith.constant dense<0.000000e+00> : vector<8x512xf32>
    %19 = tpu.matmul %18, %17, %cst_14 {dimension_numbers = #tpu.dot_dimension_numbers<[1], [0], [0], [1], [0, 0, 1, 1], [], []>} : vector<8x16xf32>, vector<16x512xf32>, vector<8x512xf32> -> vector<8x512xf32>
    %cst_15 = arith.constant 1.000000e+00 : f32
    %20 = vector.broadcast %cst_15 : f32 to vector<8x512xf32>
    %21 = arith.addf %20, %19 : vector<8x512xf32>
    %cst_16 = arith.constant 1.000000e+00 : f32
    %22 = vector.broadcast %cst_16 : f32 to vector<8x512xf32>
    %23 = arith.subf %22, %19 : vector<8x512xf32>
    %24 = arith.divf %21, %23 : vector<8x512xf32>
    %25 = math.log %24 : vector<8x512xf32>
    %cst_17 = arith.constant 5.000000e-01 : f32
    %26 = vector.broadcast %cst_17 : f32 to vector<8x512xf32>
    %27 = arith.mulf %26, %25 : vector<8x512xf32>
    %c0_18 = arith.constant 0 : index
    %c0_19 = arith.constant 0 : index
    %28 = vector.load %arg6[%c0_18, %c0_19] : memref<8x8xf32, #tpu.memory_space<vmem>>, vector<8x8xf32>
    %cst_20 = arith.constant dense<0.000000e+00> : vector<8x512xf32>
    %29 = tpu.matmul %28, %27, %cst_20 {dimension_numbers = #tpu.dot_dimension_numbers<[1], [0], [0], [1], [0, 0, 1, 1], [], []>} : vector<8x8xf32>, vector<8x512xf32>, vector<8x512xf32> -> vector<8x512xf32>
    %cst_21 = arith.constant 1.000000e+00 : f32
    %30 = vector.broadcast %cst_21 : f32 to vector<8x512xf32>
    %31 = arith.addf %30, %29 : vector<8x512xf32>
    %cst_22 = arith.constant 1.000000e+00 : f32
    %32 = vector.broadcast %cst_22 : f32 to vector<8x512xf32>
    %33 = arith.subf %32, %29 : vector<8x512xf32>
    %34 = arith.divf %31, %33 : vector<8x512xf32>
    %35 = math.log %34 : vector<8x512xf32>
    %cst_23 = arith.constant 5.000000e-01 : f32
    %36 = vector.broadcast %cst_23 : f32 to vector<8x512xf32>
    %37 = arith.mulf %36, %35 : vector<8x512xf32>
    %c0_24 = arith.constant 0 : index
    %c0_25 = arith.constant 0 : index
    %38 = vector.load %arg5[%c0_24, %c0_25] : memref<8x8xf32, #tpu.memory_space<vmem>>, vector<8x8xf32>
    %cst_26 = arith.constant dense<0.000000e+00> : vector<8x512xf32>
    %39 = tpu.matmul %38, %37, %cst_26 {dimension_numbers = #tpu.dot_dimension_numbers<[1], [0], [0], [1], [0, 0, 1, 1], [], []>} : vector<8x8xf32>, vector<8x512xf32>, vector<8x512xf32> -> vector<8x512xf32>
    %c0_27 = arith.constant 0 : index
    %c0_28 = arith.constant 0 : index
    %40 = vector.load %arg8[%c0_27, %c0_28] : memref<8x512xf32, #tpu.memory_space<vmem>>, vector<8x512xf32>
    tpu.vector_store %arg8[%c0_27, %c0_28], %39 {strides = array<i32>} : memref<8x512xf32, #tpu.memory_space<vmem>>, vector<8x512xf32>,
    return
  }
  func.func @transform_0(%arg0: i32) -> (i32, i32) {
    %c0_i32 = arith.constant 0 : i32
    %c0_i32_0 = arith.constant 0 : i32
    return %c0_i32, %arg0 : i32, i32
  }
  func.func @transform_1(%arg0: i32) -> (i32, i32) {
    %c0_i32 = arith.constant 0 : i32
    %c0_i32_0 = arith.constant 0 : i32
    %c0_i32_1 = arith.constant 0 : i32
    return %c0_i32, %c0_i32_0 : i32, i32
  }
  func.func @transform_2(%arg0: i32) -> (i32, i32) {
    %c0_i32 = arith.constant 0 : i32
    %c0_i32_0 = arith.constant 0 : i32
    %c0_i32_1 = arith.constant 0 : i32
    return %c0_i32, %c0_i32_0 : i32, i32
  }
  func.func @transform_3(%arg0: i32) -> (i32, i32) {
    %c0_i32 = arith.constant 0 : i32
    %c0_i32_0 = arith.constant 0 : i32
    %c0_i32_1 = arith.constant 0 : i32
    return %c0_i32, %c0_i32_0 : i32, i32
  }
  func.func @transform_4(%arg0: i32) -> (i32, i32) {
    %c0_i32 = arith.constant 0 : i32
    %c0_i32_0 = arith.constant 0 : i32
    %c0_i32_1 = arith.constant 0 : i32
    return %c0_i32, %c0_i32_0 : i32, i32
  }
  func.func @transform_5(%arg0: i32) -> (i32, i32) {
    %c0_i32 = arith.constant 0 : i32
    %c0_i32_0 = arith.constant 0 : i32
    %c0_i32_1 = arith.constant 0 : i32
    return %c0_i32, %c0_i32_0 : i32, i32
  }
  func.func @transform_6(%arg0: i32) -> (i32, i32) {
    %c0_i32 = arith.constant 0 : i32
    %c0_i32_0 = arith.constant 0 : i32
    %c0_i32_1 = arith.constant 0 : i32
    return %c0_i32, %c0_i32_0 : i32, i32
  }
  func.func @transform_7(%arg0: i32) -> (i32, i32) {
    %c0_i32 = arith.constant 0 : i32
    %c0_i32_0 = arith.constant 0 : i32
    return %c0_i32, %arg0 : i32, i32
  }
}

</mosaic_0001>

<bundles_post_ra>
// kernel: _forward_impl.1
= control target key start
LH: loop header
LB: loop body
LE: loop exit
PB: predicated region body
PF: predicated region fallthrough
CT: control target
= control target key end

     0   :  { %12 = vsyncpa [#allocation3], 0  ;;  %s1946_s0 = inlined_call_operand.hbm [shape: f32[8,1024], index: 0, kind: input, shape index: {}]   ;;  %s1947_s1 = inlined_call_operand.vmem [shape: f32[8,8], index: 1, kind: input, shape index: {}]   ;;  %s1948_s2 = inlined_call_operand.vmem [shape: f32[8,8], index: 2, kind: input, shape index: {}]   ;;  %s1949_s3 = inlined_call_operand.vmem [shape: f32[16,8], index: 3, kind: input, shape index: {}]   ;;  %s1950_s4 = inlined_call_operand.vmem [shape: f32[8,8], index: 4, kind: input, shape index: {}]   ;;  %s1951_s5 = inlined_call_operand.vmem [shape: f32[8,8], index: 5, kind: input, shape index: {}]   ;;  %s1952_s6 = inlined_call_operand.vmem [shape: f32[8,16], index: 6, kind: input, shape index: {}]   ;;  %s1953_s7 = inlined_call_operand.hbm [shape: f32[8,1024], index: 7, kind: output, shape index: {}]  }
   0x1   :  { %14 = vsyncpa [#allocation3 + $0x1], 0 }
   0x2   :  { %15 = vsyncpa [#allocation4], 0 }
   0x3   :  { %17 = vsyncpa [#allocation4 + $0x1], 0  ;;  %s1734_s24 = smov 0   ;;  %s1736_s25 = smov 0  }
   0x4   :  { %s1738_s26 = smov 0   ;;  %s1740_s27 = smov 0  }
   0x5 LB: > { %s1755_s28 = sadd.s32 4294967295, %s1689_s27   ;;  %s1412_s29 = sadd.s32 4294967294, %s1689_s27   ;;  %s1689_s27 = sphi %s1740_s27, %s1968_s27   ;;  %s1685_s26 = sphi %s1738_s26, %s1967_s26   ;;  %s1681_s25 = sphi %s1736_s25, %s1966_s25   ;;  %s1677_s24 = sphi %s1734_s24, %s1965_s24  }
   0x6   : > { %s1759_s30 = sadd.s32 1, %s1689_s27   ;;  %s30_s8 = sadd.s32 1, %s1685_s26 }
   0x7   : > { %s27_s9 = ssub.s32 %s1689_s27, %s1759_s30  ;;  %p37_p0 = scmp.ne.s32.totalorder %s1685_s26, %s1681_s25 }
   0x8   : > { %p28_p1 = scmp.eq.s32.totalorder %s27_s9, 0  ;;  %p38_p2 = scmp.eq.s32.totalorder %s1689_s27, 0 }
   0x9   : > { %p43_p3 = scmp.ne.s32.totalorder %s1681_s25, %s1677_s24  ;;  %p44_p4 = scmp.eq.s32.totalorder %s1755_s28, 0 }
   0xa   : > { %s1771_s10 = scalar_select %p28_p1, %s1685_s26, %s30_s8  }
   0xb   : > { %p1773_p5 = por %p38_p2, %p37_p0  ;;  %p1777_p6 = por %p44_p4, %p43_p3 }
   0xc   : > { %p193_p7 = scmp.eq.s32.totalorder %s1755_s28, 1  ;;  %p199_p8 = scmp.eq.s32.totalorder %s1412_s29, 1 }
   0xd   : > { %p1462_p10 = scmp.lt.s32.totalorder %s1689_s27, 2  ;;  %s237_s15 = sand.u32 1, %s1685_s26  }
   0xe   : > { %p1784_p11 = por %p193_p7, %p37_p0  ;;  %p1788_p12 = por %p199_p8, %p43_p3 }
   0xf   : > { %s1440_s16 = sshll.u32 %s1689_s27, 9  ;;  %s1415_s17 = sshll.u32 %s237_s15, 5 }
  0x10   : > { %s1957_s13 = scalar_select %p1784_p11, 1, 0 }
  0x11   : > { %s1958_s14 = scalar_select %p1788_p12, 1, 0 }
  0x12   : > { %s1797_s20 = scalar_lea.hbm %s1946_s0, %s1440_s16  ;;  %s241_s21 = scalar_lea.vmem [#allocation2], %s1415_s17 }
  0x13   : > { %s249_s22 = sshll.u32 %s241_s21, 4  ;;  %p1801_p13 = pnand %p1462_p10, %p1773_p5  ;;  %s1805_s22 = int_to_ptr.vmem [resolvable:$true] %s249_s22 }
  0x14   : > { %s238_s29 = scalar_lea.sflag [#allocation3], %s237_s15  ;;  %s1593_s8 = scalar_lea.hbm %s1797_s20, 512 }
  0x15   : > { %p1594_p2 = scmp.ne.s32.totalorder %s1797_s20, %s1593_s8  ;;  %p1595_p3 = pneg %p1801_p13 }
  0x16   : > { %s1598_s16 = scalar_lea.hbm %s1946_s0, 1024  ;;  %p1599_p5 = scmp.lt.u32.totalorder %s1797_s20, %s1946_s0 }
  0x17   : > { %p1596_p4 = pnand %p1595_p3, %p1594_p2  ;;  %p1600_p8 = scmp.lt.u32.totalorder %s1598_s16, %s1593_s8 }
  0x18   : > { %p1602_p9 = scmp.lt.u32.totalorder %s1593_s8, %s1797_s20 }
  0x19   : > { %p1597_p7 = pneg %p1596_p4  ;;  %p1601_p10 = por %p1600_p8, %p1599_p5 }
  0x1b   : > { %p1603_p0 = por %p1602_p9, %p1601_p10 }
  0x1d   : > { %p1604_p1 = pnand %p1603_p0, %p1597_p7 }
  0x1f   : > { %1607 = shalt.err (!%p1604_p1)
}
  0x20   : > { %s1608_s15 = scalar_lea.vmem %s1805_s22, 512  ;;  %s1691_s19 = smov [#allocation2]  }
  0x21   : > { %p1609_p2 = scmp.ne.s32.totalorder %s1805_s22, %s1608_s15  ;;  %s1613_s21 = sshll.u32 %s1691_s19, 4  ;;  %s1614_s21 = int_to_ptr.vmem [resolvable:$false] %s1613_s21 }
  0x22   : > { %s1615_s9 = scalar_lea.vmem %s1614_s21, 1024  ;;  %p1616_p11 = scmp.lt.s32.totalorder %s1805_s22, %s1614_s21 }
  0x23   : > { %p1611_p4 = pnand %p1609_p2, %p1595_p3  ;;  %p1617_p5 = scmp.lt.s32.totalorder %s1615_s9, %s1608_s15 }
  0x25   : > { %p1612_p12 = pneg %p1611_p4  ;;  %p1618_p8 = por %p1617_p5, %p1616_p11 }
  0x27   : > { %p1619_p9 = pnand %p1618_p8, %p1612_p12 }
  0x29   : > { %1622 = shalt.err (!%p1619_p9)
}
  0x2a   : > { %1457 = dma.hbm_to_vmem [thread:$0]  (!%p1801_p13), %s1797_s20, 512, %s1805_s22, %s238_s29  }
  0x2b   : > { %p1960_p0 = scmp.lt.s32.totalorder %s1689_s27, 3  ;;  %p1961_p1 = scmp.ge.s32.totalorder %s1689_s27, 1 }
  0x2d   : > { %p255_p3 = pnand %p1961_p1, %p1960_p0 }
  0x2e   : > { %s1839_s8 = sand.u32 (!%p255_p3), 1, %s1681_s25  }
  0x2f   : > { %258 = sbr.rel (%p255_p3) target bundleno = 1496 (0x5d8), region = 48  ;;  %s1419_s11 = sshll.u32 (!%p255_p3), %s1839_s8, 5 }
  0x30   : > { %s261_s16 = scalar_lea.sflag (!%p255_p3), [#allocation3], %s1839_s8  ;;  %s264_s23 = scalar_lea.vmem (!%p255_p3), [#allocation2], %s1419_s11 }
  0x36   : > { %1668 = dma.done.wait (%p1777_p6), %s261_s16, 512  }
  0x37   : > { %1670 = vsyncadd (%p1777_p6), %s261_s16, 4294966784  ;;  %v1692_v0 = vmov 0.0   ;;  %v298_v1 = vld [vmem:[%s264_s23 + $0x8] sm:$0xff]  ;;  %v300_v2 = vld [vmem:[%s264_s23 + $0x18] sm:$0xff]  ;;  %vm302_vm0 = vcmask 64512   ;;  %vm829_vm1 = vcmask 130048  }
  0x38   : > { %370 = vmatprep.mubr.f32.mxu0 %v1692_v0  ;;  %441 = vmatprep.mubr.f32.mxu1 %v1692_v0  ;;  %v297_v3 = vld [vmem:[%s264_s23] sm:$0xff]  ;;  %v299_v4 = vld [vmem:[%s264_s23 + $0x10] sm:$0xff]  ;;  %v603_v24 = vld [vmem:[%s1949_s3 + $0x8] sm:$0xff]  ;;  %s294_s12 = scalar_lea.vmem [#allocation5], %s1419_s11  ;;  %s1441_s17 = sshll.u32 %s1755_s28, 9 }
  0x39   : > { %306 = vmatprep.subr.mxu0 %v298_v1  ;;  %377 = vmatprep.subr.mxu1 %v300_v2  ;;  %v301_v5 = vld [vmem:[%s1947_s1] sm:$0xff]  ;;  %s1342_s29 = sshll.u32 %s294_s12, 4  ;;  %s1904_s19 = scalar_lea.hbm %s1953_s7, %s1441_s17  ;;  %s1899_s29 = int_to_ptr.vmem [resolvable:$true] %s1342_s29 }
  0x3a   : > { %307 = vmatpush1.msra.mxu0 %v297_v3  ;;  %378 = vmatpush1.msra.mxu1 %v299_v4  ;;  %v452_v12 = vld [vmem:[%s1948_s2] sm:$0xff]  ;;  %s1328_s11 = scalar_lea.sflag [#allocation4], %s1839_s8  ;;  %s1623_s28 = scalar_lea.vmem %s1899_s29, 512 }
  0x3b   : > { %1421 = vmatmul.mubr.msk.f32.vlgmr.msra.gmra.mrb[0].mxu0 %vm302_vm0, %v301_v5  ;;  %1422 = vmatmul.mubr.msk.f32.vlgmr.msra.gmra.mrb[0].mxu1 %vm302_vm0, %v301_v5  ;;  %v602_v21 = vld [vmem:[%s1949_s3] sm:$0xff]  ;;  %p1624_p6 = scmp.ne.s32.totalorder %s1899_s29, %s1623_s28  ;;  %p1962_p11 = scmp.ne.s32.totalorder %s1957_s13, 0 }
  0x3c   : > { %520 = vmatprep.mubr.f32.mxu0 %v1692_v0  ;;  %591 = vmatprep.mubr.f32.mxu1 %v1692_v0  ;;  %s1693_s21 = smov [#allocation5]  }
  0x3d   : > { %p1625_p12 = pnand %p1624_p6, %p1962_p11  ;;  %s1627_s9 = sshll.u32 %s1693_s21, 4  ;;  %s1628_s9 = int_to_ptr.vmem [resolvable:$false] %s1627_s9 }
  0x3e   : > { %s1629_s16 = scalar_lea.vmem %s1628_s9, 1024  ;;  %p1630_p7 = scmp.lt.s32.totalorder %s1899_s29, %s1628_s9 }
  0x3f   : > { %p1626_p13 = pneg %p1625_p12  ;;  %p1631_p10 = scmp.lt.s32.totalorder %s1629_s16, %s1623_s28 }
  0x41   : > { %p1632_p2 = por %p1631_p10, %p1630_p7 }
  0x43   : > { %p1633_p4 = pnand %p1632_p2, %p1626_p13 }
 0x10e   : > { %v372_v6 = vpop.f32.mrb[0].mxu0  ;;  %v443_v7 = vpop.f32.mrb[0].mxu1 }
 0x10f   : > { %v374_v8 = vpop.f32.mrb[1].mxu0  ;;  %v445_v9 = vpop.f32.mrb[1].mxu1  ;;  %1497 = vtanh.f32 %v372_v6 }
 0x110   : > { %1499 = vtanh.f32 %v374_v8 }
 0x111   : > { %1501 = vtanh.f32 %v445_v9 }
 0x112   : > { %1503 = vtanh.f32 %v443_v7 }
 0x119   : > { %v1498_v10 = vpop.eup %1497 }
 0x11a   : > { %v1500_v11 = vpop.eup %1499 }
 0x11b   : > { %v1502_v13 = vpop.eup %1501  ;;  %456 = vmatprep.subr.mxu0 %v1500_v11 }
 0x11c   : > { %v1504_v14 = vpop.eup %1503  ;;  %527 = vmatprep.subr.mxu1 %v1502_v13  ;;  %457 = vmatpush1.msra.mxu0 %v1498_v10 }
 0x11d   : > { %528 = vmatpush1.msra.mxu1 %v1504_v14  ;;  %1423 = vmatmul.mubr.msk.f32.vlgmr.msra.gmra.mrb[2].mxu0 %vm302_vm0, %v452_v12 }
 0x11e   : > { %1424 = vmatmul.mubr.msk.f32.vlgmr.msra.gmra.mrb[2].mxu1 %vm302_vm0, %v452_v12  ;;  %674 = vmatprep.mubr.f32.mxu0 %v1692_v0 }
 0x11f   : > { %751 = vmatprep.mubr.f32.mxu1 %v1692_v0 }
 0x1f0   : > { %v522_v15 = vpop.f32.mrb[2].mxu0 }
 0x1f1   : > { %v593_v16 = vpop.f32.mrb[2].mxu1  ;;  %v524_v17 = vpop.f32.mrb[3].mxu0  ;;  %1505 = vtanh.f32 %v522_v15 }
 0x1f2   : > { %v595_v18 = vpop.f32.mrb[3].mxu1  ;;  %1507 = vtanh.f32 %v524_v17 }
 0x1f3   : > { %1509 = vtanh.f32 %v595_v18 }
 0x1f4   : > { %1511 = vtanh.f32 %v593_v16 }
 0x1fb   : > { %v1506_v19 = vpop.eup %1505 }
 0x1fc   : > { %v1508_v20 = vpop.eup %1507 }
 0x1fd   : > { %v1510_v22 = vpop.eup %1509  ;;  %610 = vmatprep.subr.mxu0 %v1508_v20 }
 0x1fe   : > { %v1512_v23 = vpop.eup %1511  ;;  %687 = vmatprep.subr.mxu1 %v1510_v22  ;;  %611 = vmatpush1.msra.mxu0 %v1506_v19 }
 0x1ff   : > { %688 = vmatpush1.msra.mxu1 %v1512_v23  ;;  %1425 = vmatmul.mubr.msk.f32.vlgmr.msra.gmra.mrb[4].mxu0 %vm302_vm0, %v602_v21 }
 0x200   : > { %1427 = vmatmul.mubr.msk.f32.vlgmr.msra.gmra.mrb[4].mxu1 %vm302_vm0, %v602_v21  ;;  %680 = vmatprep.mubr.f32.mxu0 %v1692_v0 }
 0x201   : > { %757 = vmatprep.mubr.f32.mxu1 %v1692_v0 }
 0x203   : > { %1426 = vmatmul.mubr.msk.f32.gmra.mrb[6].mxu0 %vm302_vm0, %v603_v24 }
 0x204   : > { %1428 = vmatmul.mubr.msk.f32.gmra.mrb[6].mxu1 %vm302_vm0, %v603_v24  ;;  %897 = vmatprep.mubr.f32.mxu0 %v1692_v0 }
 0x205   : > { %968 = vmatprep.mubr.f32.mxu1 %v1692_v0 }
 0x2d2   : > { %v676_v25 = vpop.f32.mrb[4].mxu0 }
 0x2d3   : > { %1513 = vtanh.f32 %v676_v25  ;;  %v753_v26 = vpop.f32.mrb[4].mxu1  ;;  %v678_v27 = vpop.f32.mrb[5].mxu0 }
 0x2d4   : > { %1515 = vtanh.f32 %v753_v26  ;;  %v755_v28 = vpop.f32.mrb[5].mxu1 }
 0x2d5   : > { %1517 = vtanh.f32 %v678_v27 }
 0x2d6   : > { %1519 = vtanh.f32 %v755_v28  ;;  %v682_v29 = vpop.f32.mrb[6].mxu0 }
 0x2d7   : > { %1521 = vtanh.f32 %v682_v29  ;;  %v759_v30 = vpop.f32.mrb[6].mxu1  ;;  %v684_v31 = vpop.f32.mrb[7].mxu0 }
 0x2d8   : > { %1523 = vtanh.f32 %v759_v30  ;;  %v761_v32 = vpop.f32.mrb[7].mxu1 }
 0x2d9   : > { %1525 = vtanh.f32 %v684_v31 }
 0x2da   : > { %1527 = vtanh.f32 %v761_v32 }
 0x2dd   : > { %v1514_v33 = vpop.eup %1513 }
 0x2de   : > { %v1516_v34 = vpop.eup %1515  ;;  %v780_v35 = vsub.f32 1.0, %v1514_v33  ;;  %v772_v49 = vadd.f32 1.0, %v1514_v33 }
 0x2df   : > { %v1518_v36 = vpop.eup %1517  ;;  %v782_v37 = vsub.f32 1.0, %v1516_v34  ;;  %v774_v51 = vadd.f32 1.0, %v1516_v34 }
 0x2e0   : > { %v1520_v38 = vpop.eup %1519  ;;  %1529 = vrcp.f32 %v780_v35  ;;  %v781_v39 = vsub.f32 1.0, %v1518_v36  ;;  %v773_v53 = vadd.f32 1.0, %v1518_v36 }
 0x2e1   : > { %v1522_v40 = vpop.eup %1521  ;;  %1531 = vrcp.f32 %v782_v37  ;;  %v783_v41 = vsub.f32 1.0, %v1520_v38  ;;  %v775_v56 = vadd.f32 1.0, %v1520_v38  ;;  %v828_v38 = vld [vmem:[%s1952_s6] sm:$0xff] }
 0x2e2   : > { %v1524_v42 = vpop.eup %1523  ;;  %1533 = vrcp.f32 %v781_v39  ;;  %v784_v43 = vsub.f32 1.0, %v1522_v40  ;;  %v776_v59 = vadd.f32 1.0, %v1522_v40 }
 0x2e3   : > { %v1526_v44 = vpop.eup %1525  ;;  %1535 = vrcp.f32 %v783_v41  ;;  %v786_v45 = vsub.f32 1.0, %v1524_v42  ;;  %v778_v62 = vadd.f32 1.0, %v1524_v42 }
 0x2e4   : > { %v1528_v46 = vpop.eup %1527  ;;  %1537 = vrcp.f32 %v784_v43  ;;  %v785_v47 = vsub.f32 1.0, %v1526_v44  ;;  %v777_v2 = vadd.f32 1.0, %v1526_v44 }
 0x2e5   : > { %1539 = vrcp.f32 %v786_v45  ;;  %v787_v48 = vsub.f32 1.0, %v1528_v46  ;;  %v779_v5 = vadd.f32 1.0, %v1528_v46 }
 0x2e6   : > { %1541 = vrcp.f32 %v785_v47 }
 0x2e7   : > { %1543 = vrcp.f32 %v787_v48 }
 0x2ea   : > { %v1530_v50 = vpop.eup %1529 }
 0x2eb   : > { %v1532_v52 = vpop.eup %1531  ;;  %v789_v54 = vmul.f32 %v1530_v50, %v772_v49 }
 0x2ec   : > { %v1534_v55 = vpop.eup %1533  ;;  %v793_v57 = vmul.f32 %v1532_v52, %v774_v51 }
 0x2ed   : > { %v1536_v58 = vpop.eup %1535  ;;  %v791_v60 = vmul.f32 %v1534_v55, %v773_v53  ;;  %1545 = vlog2.f32 %v789_v54 }
 0x2ee   : > { %v1538_v61 = vpop.eup %1537  ;;  %v795_v63 = vmul.f32 %v1536_v58, %v775_v56  ;;  %1547 = vlog2.f32 %v793_v57 }
 0x2ef   : > { %v1540_v1 = vpop.eup %1539  ;;  %1549 = vlog2.f32 %v791_v60  ;;  %v797_v3 = vmul.f32 %v1538_v61, %v776_v59 }
 0x2f0   : > { %v1542_v4 = vpop.eup %1541  ;;  %1551 = vlog2.f32 %v795_v63  ;;  %v801_v6 = vmul.f32 %v1540_v1, %v778_v62 }
 0x2f1   : > { %v1544_v7 = vpop.eup %1543  ;;  %v799_v8 = vmul.f32 %v1542_v4, %v777_v2  ;;  %1553 = vlog2.f32 %v797_v3 }
 0x2f2   : > { %v803_v9 = vmul.f32 %v1544_v7, %v779_v5  ;;  %1555 = vlog2.f32 %v801_v6  ;;  %v1003_v7 = vld [vmem:[%s1951_s5] sm:$0xff] }
 0x2f3   : > { %1557 = vlog2.f32 %v799_v8 }
 0x2f4   : > { %1559 = vlog2.f32 %v803_v9 }
 0x2f7   : > { %v1546_v10 = vpop.eup %1545 }
 0x2f8   : > { %v1548_v11 = vpop.eup %1547  ;;  %v805_v14 = vmul.f32 0.6931472, %v1546_v10 }
 0x2f9   : > { %v1550_v12 = vpop.eup %1549  ;;  %v809_v16 = vmul.f32 0.6931472, %v1548_v11 }
 0x2fa   : > { %v1552_v13 = vpop.eup %1551  ;;  %v807_v18 = vmul.f32 0.6931472, %v1550_v12  ;;  %v820_v25 = vmul.f32 0.5, %v805_v14 }
 0x2fb   : > { %v1554_v15 = vpop.eup %1553  ;;  %v811_v21 = vmul.f32 0.6931472, %v1552_v13  ;;  %v822_v28 = vmul.f32 0.5, %v809_v16 }
 0x2fc   : > { %v1556_v17 = vpop.eup %1555  ;;  %v813_v19 = vmul.f32 0.6931472, %v1554_v15  ;;  %v821_v30 = vmul.f32 0.5, %v807_v18 }
 0x2fd   : > { %v1558_v20 = vpop.eup %1557  ;;  %v817_v22 = vmul.f32 0.6931472, %v1556_v17  ;;  %v823_v33 = vmul.f32 0.5, %v811_v21 }
 0x2fe   : > { %v1560_v23 = vpop.eup %1559  ;;  %v815_v24 = vmul.f32 0.6931472, %v1558_v20  ;;  %v824_v26 = vmul.f32 0.5, %v813_v19 }
 0x2ff   : > { %v819_v27 = vmul.f32 0.6931472, %v1560_v23  ;;  %v826_v29 = vmul.f32 0.5, %v817_v22 }
 0x300   : > { %v825_v31 = vmul.f32 0.5, %v815_v24  ;;  %v1444_v32 = vpack.c.bf16 %v824_v26, %v820_v25 }
 0x301   : > { %v827_v34 = vmul.f32 0.5, %v819_v27  ;;  %v1448_v35 = vpack.c.bf16 %v826_v29, %v822_v28 }
 0x302   : > { %v1442_v36 = vpack.c.bf16 %v825_v31, %v821_v30 }
 0x303   : > { %v1446_v37 = vpack.c.bf16 %v827_v34, %v823_v33 }
 0x304   : > { %1443 = vmatprep.subr.bf16.mxu0 %v1442_v36 }
 0x305   : > { %1447 = vmatprep.subr.bf16.mxu1 %v1446_v37  ;;  %1445 = vmatpush1.bf16.msra.mxu0 %v1444_v32 }
 0x306   : > { %1449 = vmatpush1.bf16.msra.mxu1 %v1448_v35 }
 0x308   : > { %1429 = vmatmul.mubr.msk.f32.vlgmr.msra.gmra.mrb[8].mxu0 %vm829_vm1, %v828_v38 }
 0x309   : > { %1430 = vmatmul.mubr.msk.f32.vlgmr.msra.gmra.mrb[8].mxu1 %vm829_vm1, %v828_v38  ;;  %1071 = vmatprep.mubr.f32.mxu0 %v1692_v0 }
 0x30a   : > { %1142 = vmatprep.mubr.f32.mxu1 %v1692_v0 }
 0x3db   : > { %v899_v39 = vpop.f32.mrb[8].mxu0 }
 0x3dc   : > { %v979_v40 = vsub.f32 1.0, %v899_v39  ;;  %v970_v41 = vpop.f32.mrb[8].mxu1  ;;  %v901_v42 = vpop.f32.mrb[9].mxu0  ;;  %v975_v47 = vadd.f32 1.0, %v899_v39  ;;  %v1177_v39 = vld [vmem:[%s1950_s4] sm:$0xff] }
 0x3dd   : > { %v981_v43 = vsub.f32 1.0, %v970_v41  ;;  %v980_v44 = vsub.f32 1.0, %v901_v42  ;;  %v972_v45 = vpop.f32.mrb[9].mxu1  ;;  %v977_v49 = vadd.f32 1.0, %v970_v41  ;;  %v976_v52 = vadd.f32 1.0, %v901_v42 }
 0x3de   : > { %1561 = vrcp.f32 %v979_v40  ;;  %v982_v46 = vsub.f32 1.0, %v972_v45  ;;  %v978_v55 = vadd.f32 1.0, %v972_v45 }
 0x3df   : > { %1563 = vrcp.f32 %v981_v43 }
 0x3e0   : > { %1565 = vrcp.f32 %v980_v44 }
 0x3e1   : > { %1567 = vrcp.f32 %v982_v46 }
 0x3e8   : > { %v1562_v48 = vpop.eup %1561 }
 0x3e9   : > { %v1564_v50 = vpop.eup %1563  ;;  %v984_v51 = vmul.f32 %v1562_v48, %v975_v47 }
 0x3ea   : > { %v1566_v53 = vpop.eup %1565  ;;  %v988_v54 = vmul.f32 %v1564_v50, %v977_v49 }
 0x3eb   : > { %v1568_v56 = vpop.eup %1567  ;;  %1569 = vlog2.f32 %v984_v51  ;;  %v986_v57 = vmul.f32 %v1566_v53, %v976_v52 }
 0x3ec   : > { %1571 = vlog2.f32 %v988_v54  ;;  %v990_v58 = vmul.f32 %v1568_v56, %v978_v55 }
 0x3ed   : > { %1573 = vlog2.f32 %v986_v57 }
 0x3ee   : > { %1575 = vlog2.f32 %v990_v58 }
 0x3f5   : > { %v1570_v59 = vpop.eup %1569 }
 0x3f6   : > { %v1572_v60 = vpop.eup %1571  ;;  %v992_v62 = vmul.f32 0.6931472, %v1570_v59 }
 0x3f7   : > { %v1574_v61 = vpop.eup %1573  ;;  %v996_v1 = vmul.f32 0.6931472, %v1572_v60 }
 0x3f8   : > { %v1576_v63 = vpop.eup %1575  ;;  %v994_v2 = vmul.f32 0.6931472, %v1574_v61  ;;  %v999_v6 = vmul.f32 0.5, %v992_v62 }
 0x3f9   : > { %v998_v3 = vmul.f32 0.6931472, %v1576_v63  ;;  %v1001_v8 = vmul.f32 0.5, %v996_v1 }
 0x3fa   : > { %v1000_v4 = vmul.f32 0.5, %v994_v2 }
 0x3fb   : > { %v1002_v5 = vmul.f32 0.5, %v998_v3 }
 0x3fc   : > { %1007 = vmatprep.subr.mxu0 %v1000_v4 }
 0x3fd   : > { %1078 = vmatprep.subr.mxu1 %v1002_v5  ;;  %1008 = vmatpush1.msra.mxu0 %v999_v6 }
 0x3fe   : > { %1079 = vmatpush1.msra.mxu1 %v1001_v8  ;;  %1431 = vmatmul.mubr.msk.f32.vlgmr.msra.gmra.mrb[10].mxu0 %vm302_vm0, %v1003_v7 }
 0x3ff   : > { %1432 = vmatmul.mubr.msk.f32.vlgmr.msra.gmra.mrb[10].mxu1 %vm302_vm0, %v1003_v7  ;;  %1245 = vmatprep.mubr.f32.mxu0 %v1692_v0 }
 0x400   : > { %1316 = vmatprep.mubr.f32.mxu1 %v1692_v0 }
 0x4d1   : > { %v1073_v9 = vpop.f32.mrb[10].mxu0 }
 0x4d2   : > { %v1153_v10 = vsub.f32 1.0, %v1073_v9  ;;  %v1144_v11 = vpop.f32.mrb[10].mxu1  ;;  %v1075_v12 = vpop.f32.mrb[11].mxu0  ;;  %v1149_v17 = vadd.f32 1.0, %v1073_v9 }
 0x4d3   : > { %v1155_v13 = vsub.f32 1.0, %v1144_v11  ;;  %v1154_v14 = vsub.f32 1.0, %v1075_v12  ;;  %v1146_v15 = vpop.f32.mrb[11].mxu1  ;;  %v1151_v19 = vadd.f32 1.0, %v1144_v11  ;;  %v1150_v22 = vadd.f32 1.0, %v1075_v12 }
 0x4d4   : > { %1577 = vrcp.f32 %v1153_v10  ;;  %v1156_v16 = vsub.f32 1.0, %v1146_v15  ;;  %v1152_v24 = vadd.f32 1.0, %v1146_v15 }
 0x4d5   : > { %1579 = vrcp.f32 %v1155_v13 }
 0x4d6   : > { %1581 = vrcp.f32 %v1154_v14 }
 0x4d7   : > { %1583 = vrcp.f32 %v1156_v16 }
 0x4de   : > { %v1578_v18 = vpop.eup %1577 }
 0x4df   : > { %v1580_v20 = vpop.eup %1579  ;;  %v1158_v21 = vmul.f32 %v1578_v18, %v1149_v17 }
 0x4e0   : > { %v1582_v23 = vpop.eup %1581  ;;  %v1162_v0 = vmul.f32 %v1580_v20, %v1151_v19 }
 0x4e1   : > { %v1584_v25 = vpop.eup %1583  ;;  %1585 = vlog2.f32 %v1158_v21  ;;  %v1160_v26 = vmul.f32 %v1582_v23, %v1150_v22 }
 0x4e2   : > { %1587 = vlog2.f32 %v1162_v0  ;;  %v1164_v27 = vmul.f32 %v1584_v25, %v1152_v24 }
 0x4e3   : > { %1589 = vlog2.f32 %v1160_v26 }
 0x4e4   : > { %1591 = vlog2.f32 %v1164_v27 }
 0x4eb   : > { %v1586_v28 = vpop.eup %1585 }
 0x4ec   : > { %v1588_v29 = vpop.eup %1587  ;;  %v1166_v31 = vmul.f32 0.6931472, %v1586_v28 }
 0x4ed   : > { %v1590_v30 = vpop.eup %1589  ;;  %v1170_v33 = vmul.f32 0.6931472, %v1588_v29 }
 0x4ee   : > { %v1592_v32 = vpop.eup %1591  ;;  %v1168_v34 = vmul.f32 0.6931472, %v1590_v30  ;;  %v1173_v38 = vmul.f32 0.5, %v1166_v31 }
 0x4ef   : > { %v1172_v35 = vmul.f32 0.6931472, %v1592_v32  ;;  %v1175_v40 = vmul.f32 0.5, %v1170_v33 }
 0x4f0   : > { %v1174_v36 = vmul.f32 0.5, %v1168_v34 }
 0x4f1   : > { %v1176_v37 = vmul.f32 0.5, %v1172_v35 }
 0x4f2   : > { %1181 = vmatprep.subr.mxu0 %v1174_v36 }
 0x4f3   : > { %1252 = vmatprep.subr.mxu1 %v1176_v37  ;;  %1182 = vmatpush1.msra.mxu0 %v1173_v38 }
 0x4f4   : > { %1253 = vmatpush1.msra.mxu1 %v1175_v40  ;;  %1433 = vmatmul.mubr.msk.f32.vlgmr.msra.gmra.mrb[12].mxu0 %vm302_vm0, %v1177_v39 }
 0x4f5   : > { %1434 = vmatmul.mubr.msk.f32.vlgmr.msra.gmra.mrb[12].mxu1 %vm302_vm0, %v1177_v39 }
 0x5c7   : > { %v1247_v41 = vpop.f32.mrb[12].mxu0 }
 0x5c8   : > { %1323 = vst [vmem:[%s294_s12] sm:$0xff] %v1247_v41  ;;  %v1318_v42 = vpop.f32.mrb[12].mxu1  ;;  %v1249_v43 = vpop.f32.mrb[13].mxu0 }
 0x5c9   : > { %1325 = vst [vmem:[%s294_s12 + $0x10] sm:$0xff] %v1318_v42  ;;  %1324 = vst [vmem:[%s294_s12 + $0x8] sm:$0xff] %v1249_v43  ;;  %v1320_v44 = vpop.f32.mrb[13].mxu1 }
 0x5ca   : > { %1326 = vst [vmem:[%s294_s12 + $0x18] sm:$0xff] %v1320_v44 }
 0x5cb   : > { %1636 = shalt.err (!%p1633_p4)
}
 0x5cc   : > { %s1637_s8 = scalar_lea.hbm %s1904_s19, 512  ;;  %s1641_s22 = scalar_lea.hbm %s1953_s7, 1024 }
 0x5cd   : > { %p1638_p5 = scmp.ne.s32.totalorder %s1904_s19, %s1637_s8  ;;  %p1642_p0 = scmp.lt.u32.totalorder %s1904_s19, %s1953_s7 }
 0x5ce   : > { %p1643_p1 = scmp.lt.u32.totalorder %s1641_s22, %s1637_s8  ;;  %p1645_p6 = scmp.lt.u32.totalorder %s1637_s8, %s1904_s19 }
 0x5cf   : > { %p1639_p8 = pnand %p1638_p5, %p1962_p11 }
 0x5d0   : > { %p1644_p3 = por %p1643_p1, %p1642_p0 }
 0x5d1   : > { %p1640_p9 = pneg %p1639_p8 }
 0x5d2   : > { %p1646_p12 = por %p1645_p6, %p1644_p3 }
 0x5d4   : > { %p1647_p13 = pnand %p1646_p12, %p1640_p9 }
 0x5d6   : > { %1650 = shalt.err (!%p1647_p13)
}
 0x5d7   : > { %1452 = dma.vmem_to_hbm [thread:$0]  (%p1962_p11), %s1899_s29, 512, %s1904_s19, %s1328_s11  }
 0x5d8 PF: > { %s1354_s18 = sand.u32 1, %s1677_s24   ;;  %p1963_p7 = scmp.ne.s32.totalorder %s1958_s14, 0 }
 0x5d9   : > { %p1964_p10 = scmp.ge.s32.totalorder %s1689_s27, 2  ;;  %s1355_s15 = scalar_lea.sflag [#allocation4], %s1354_s18 }
 0x5db   : > { %p1459_p2 = pnand %p1964_p10, %p1963_p7 }
 0x5dd   : > { %1672 = dma.done.wait (!%p1459_p2), %s1355_s15, 512  }
 0x5de   : > { %1674 = vsyncadd (!%p1459_p2), %s1355_s15, 4294966784  ;;  %p20_p4 = scmp.ge.s32.totalorder %s1759_s30, 4   ;;  %s1965_s24 = smov %s1681_s25 }
 0x5df   : > { %s1966_s25 = smov %s1685_s26  ;;  %s1967_s26 = smov %s1771_s10 }
 0x5e0   : > { %s1968_s27 = smov %s1759_s30  ;;  %22 = sbr.rel (!%p20_p4) target bundleno = 5 (0x5), region = 93 }
 0x5e7   :  { %1360 = vsyncpa [#allocation3], 1 }
 0x5e8   :  { %1362 = vsyncpa [#allocation3 + $0x1], 1 }
 0x5e9   :  { %1363 = vsyncpa [#allocation4], 1 }
 0x5ea   :  { %1365 = vsyncpa [#allocation4 + $0x1], 1 }

</bundles_post_ra>
